<compile_context>
chip_gen: v7x
topology: tpu7x:2x2x1
jax: 0.10.0
libtpu: 0.0.40
codegen_flags: <defaults>
</compile_context>

<pallas_src>
import jax
import jax.numpy as jnp
from jax.experimental import pallas as pl
from jax.experimental.pallas import tpu as pltpu


def _attn_pool_kernel(x_ref, w1_ref, b1_ref, w2_ref, b2_ref, o_ref):
    tb, n, d = x_ref.shape
    x = x_ref[...]                                      # (TB, N, D), input dtype
    xf = x.astype(jnp.float32)

    # ---- MLP scorer: Linear -> ReLU -> (Dropout = identity) -> Linear(., 1) ----
    # First Linear as one lane/sublane-dense (TB*N, D) @ (D, D) MXU matmul.
    h = jnp.dot(
        x.reshape(tb * n, d).astype(w1_ref.dtype),      # bf16 feed by default
        w1_ref[...],
        preferred_element_type=jnp.float32,
    )                                                   # (TB*N, D) f32
    h = jnp.maximum(h + b1_ref[...].astype(jnp.float32), 0.0)

    # Second Linear has output width 1 -> VPU multiply + lane reduce instead of a
    # (D, 1) matmul that would waste 127/255 MXU columns.
    w2_row = w2_ref[...].astype(jnp.float32)            # (1, D)
    logits = (
        jnp.sum(h.reshape(tb, n, d) * w2_row, axis=-1)  # (TB, N)
        + b2_ref[0, 0]                                  # scalar bias from SMEM
    )

    # ---- numerically stable softmax over the region axis N (lane axis) ----
    m = jnp.max(logits, axis=-1, keepdims=True)         # (TB, 1)
    e = jnp.exp(logits - m)                             # (TB, N)
    attn = e * pl.reciprocal(jnp.sum(e, axis=-1, keepdims=True), approx=True)

    # ---- weighted pooling: pooled[b, d] = sum_n attn[b, n] * x[b, n, d] ----
    # VPU broadcast-multiply + sublane reduce; robust lowering and off the MXU.
    # (Could also be einsum('bn,bnd->bd') on the MXU, but that is TB tiny
    #  (1, N) @ (N, D) matmuls — no win at these shapes.)
    pooled = jnp.sum(xf * attn[:, :, None], axis=1)     # (TB, D) f32
    o_ref[...] = pooled.astype(o_ref.dtype)             # lane-dense (TB, D) store


def _pick_batch_tile(B, N, D, x_itemsize, w_itemsize,
                     target_rows=256, vmem_budget_bytes=16 * 1024 * 1024):
    """Largest TB s.t. TB*N >= target_rows (fills the MXU) and blocks fit a
    conservative VMEM budget (safe on v7x's 64 MiB / 32 MiB scoped default)."""
    tb = max(1, -(-target_rows // N))                   # ceil(target_rows / N)

    def resident(t):
        x_blk = 2 * t * N * D * x_itemsize              # double-buffered input block
        work = 3 * t * N * D * 4                        # f32 working copies (x, h, prod)
        wgt = 2 * D * D * w_itemsize + 4 * D * 4        # W1 (2x buffered) + b1/w2 rows
        out = 2 * t * D * 4                             # double-buffered output block
        return x_blk + work + wgt + out

    while tb > 1 and resident(tb) > vmem_budget_bytes:
        tb //= 2
    if tb >= B:
        return B                                        # one block covers the batch
    return max(8, (tb // 8) * 8)                        # keep (TB, D) block 8-aligned


def attention_pooling(features, w1, b1, w2, b2, *, mxu_dtype=jnp.bfloat16):
    """features: [B, N, D]; w1: [D, D] (in, out); b1: [D]; w2: [D, 1]; b2: [1].

    Returns pooled features [B, D] == PyTorch AttentionPooling.forward (eval mode).
    """
    B, N, D = features.shape

    w1_m = w1.astype(mxu_dtype)                         # MXU-fed weight (bf16 on v6e/v7x)
    b1_row = b1.reshape(1, D).astype(jnp.float32)
    w2_row = w2.reshape(1, D).astype(jnp.float32)       # row layout for the VPU reduce
    b2_sc = b2.reshape(1, 1).astype(jnp.float32)        # scalar bias, lives in SMEM

    tb = _pick_batch_tile(B, N, D,
                          jnp.dtype(features.dtype).itemsize,
                          jnp.dtype(w1_m.dtype).itemsize)
    b_pad = ((B + tb - 1) // tb) * tb
    x = features
    if b_pad != B:
        # Zero padding is inert: padded rows only produce outputs that are sliced
        # away below (relu/exp of finite biases stay finite -> no NaNs).
        x = jnp.pad(features, ((0, b_pad - B), (0, 0), (0, 0)))

    out = pl.pallas_call(
        _attn_pool_kernel,
        out_shape=jax.ShapeDtypeStruct((b_pad, D), features.dtype),
        grid_spec=pltpu.PrefetchScalarGridSpec(
            num_scalar_prefetch=0,
            grid=(b_pad // tb,),
            in_specs=[
                pl.BlockSpec((tb, N, D), lambda i: (i, 0, 0)),        # features tile
                pl.BlockSpec((D, D), lambda i: (0, 0)),               # W1 (pinned)
                pl.BlockSpec((1, D), lambda i: (0, 0)),               # b1 row
                pl.BlockSpec((1, D), lambda i: (0, 0)),               # w2 row
                pl.BlockSpec(memory_space=pltpu.MemorySpace.SMEM),    # b2 scalar
            ],
            out_specs=pl.BlockSpec((tb, D), lambda i: (i, 0)),        # lane-dense slab
        ),
        compiler_params=pltpu.CompilerParams(
            # Batch-tile axis is embarrassingly parallel -> shards across the two
            # TensorCores on v7x; harmless on single-TC v5e/v6e.
            dimension_semantics=("parallel",),
            vmem_limit_bytes=32 * 1024 * 1024,
        ),
    )(x, w1_m, b1_row, w2_row, b2_sc)
    return out[:B]


def _reference(features, w1, b1, w2, b2, mxu_dtype=jnp.float32):
    """Pure-JAX reference matching PyTorch semantics; optionally emulates the
    bf16 rounding of the first-matmul operands (f32 accumulation)."""
    xq = features.astype(mxu_dtype).astype(jnp.float32)
    w1q = w1.astype(mxu_dtype).astype(jnp.float32)
    h = jnp.maximum(jnp.einsum("bnd,df->bnf", xq, w1q) + b1, 0.0)
    logits = jnp.einsum("bnf,fo->bno", h, w2) + b2                    # [B, N, 1]
    attn = jax.nn.softmax(logits, axis=1)
    return jnp.sum(features * attn, axis=1)


if __name__ == "__main__":
    B, N, D = 4, 8, 128   # [batch, num_regions/words, feature_dim] — small test shapes

    key = jax.random.PRNGKey(0)
    kx, k1, k2, k3, k4 = jax.random.split(key, 5)

    features = jax.random.normal(kx, (B, N, D), dtype=jnp.float32)
    # nn.Linear(D, D) and nn.Linear(D, 1) params, stored (in_dim, out_dim) so the
    # kernel computes x @ W (== PyTorch x @ W.T convention).
    w1 = jax.random.normal(k1, (D, D), dtype=jnp.float32) * (1.0 / jnp.sqrt(D))
    b1 = jax.random.normal(k2, (D,), dtype=jnp.float32) * 0.01
    w2 = jax.random.normal(k3, (D, 1), dtype=jnp.float32) * (1.0 / jnp.sqrt(D))
    b2 = jax.random.normal(k4, (1,), dtype=jnp.float32) * 0.01

    # Exact-precision path (f32 MXU feed) — strict check.
    pooled_f32 = attention_pooling(features, w1, b1, w2, b2, mxu_dtype=jnp.float32)
    jax.block_until_ready(pooled_f32)
    ref_f32 = _reference(features, w1, b1, w2, b2, mxu_dtype=jnp.float32)
    assert pooled_f32.shape == (B, D)
    assert jnp.allclose(pooled_f32, ref_f32, atol=1e-2, rtol=1e-2), "f32 path mismatch"

    # Default fast path: bf16 MXU feed (v6e/v7x), f32 accumulation + f32 softmax,
    # checked against a bf16-rounding-emulated reference.
    pooled_bf16 = attention_pooling(features, w1, b1, w2, b2, mxu_dtype=jnp.bfloat16)
    jax.block_until_ready(pooled_bf16)
    ref_bf16 = _reference(features, w1, b1, w2, b2, mxu_dtype=jnp.bfloat16)
    assert pooled_bf16.shape == (B, D)
    assert jnp.allclose(pooled_bf16, ref_bf16, atol=1e-2, rtol=1e-2), "bf16 path mismatch"

    print("KERNEL_OK")
</pallas_src>

<mosaic_0001>
module attributes {stable_mosaic.version = 11 : i64} {
  func.func @_attn_pool_kernel(%arg0: i32, %arg1: memref<4x8x128xf32, #tpu.memory_space<vmem>>, %arg2: memref<128x128xf32, #tpu.memory_space<vmem>>, %arg3: memref<1x128xf32, #tpu.memory_space<vmem>>, %arg4: memref<1x128xf32, #tpu.memory_space<vmem>>, %arg5: memref<1x1xf32, #tpu.memory_space<smem>>, %arg6: memref<4x128xf32, #tpu.memory_space<vmem>>) attributes {dimension_semantics = [#tpu.dimension_semantics<parallel>], iteration_bounds = array<i64: 1>, scalar_prefetch = 0 : i64, scratch_operands = 0 : i64, tpu.core_type = #tpu.core_type<tc>, window_params = [{transform_indices = @transform_0, window_bounds = array<i64: 4, 8, 128>}, {pipeline_mode = #tpu.pipeline_mode<synchronous>, transform_indices = @transform_1, window_bounds = array<i64: 128, 128>}, {pipeline_mode = #tpu.pipeline_mode<synchronous>, transform_indices = @transform_2, window_bounds = array<i64: 1, 128>}, {pipeline_mode = #tpu.pipeline_mode<synchronous>, transform_indices = @transform_3, window_bounds = array<i64: 1, 128>}, {transform_indices = @transform_4, window_bounds = array<i64: 1, 1>}, {transform_indices = @transform_5, window_bounds = array<i64: 4, 128>}]} {
    %c0 = arith.constant 0 : index
    %c0_0 = arith.constant 0 : index
    %c0_1 = arith.constant 0 : index
    %0 = vector.load %arg1[%c0, %c0_0, %c0_1] : memref<4x8x128xf32, #tpu.memory_space<vmem>>, vector<4x8x128xf32>
    %1 = vector.shape_cast %0 : vector<4x8x128xf32> to vector<32x128xf32>
    %c0_2 = arith.constant 0 : index
    %c0_3 = arith.constant 0 : index
    %2 = vector.load %arg2[%c0_2, %c0_3] : memref<128x128xf32, #tpu.memory_space<vmem>>, vector<128x128xf32>
    %cst = arith.constant dense<0.000000e+00> : vector<32x128xf32>
    %3 = tpu.matmul %1, %2, %cst {dimension_numbers = #tpu.dot_dimension_numbers<[1], [0], [0], [1], [0, 0, 1, 1], [], []>} : vector<32x128xf32>, vector<128x128xf32>, vector<32x128xf32> -> vector<32x128xf32>
    %c0_4 = arith.constant 0 : index
    %c0_5 = arith.constant 0 : index
    %4 = vector.load %arg3[%c0_4, %c0_5] : memref<1x128xf32, #tpu.memory_space<vmem>>, vector<1x128xf32>
    %5 = vector.broadcast %4 : vector<1x128xf32> to vector<32x128xf32>
    %6 = arith.addf %3, %5 : vector<32x128xf32>
    %cst_6 = arith.constant 0.000000e+00 : f32
    %7 = vector.broadcast %cst_6 : f32 to vector<32x128xf32>
    %8 = arith.maximumf %6, %7 : vector<32x128xf32>
    %c0_7 = arith.constant 0 : index
    %c0_8 = arith.constant 0 : index
    %9 = vector.load %arg4[%c0_7, %c0_8] : memref<1x128xf32, #tpu.memory_space<vmem>>, vector<1x128xf32>
    %10 = vector.shape_cast %8 : vector<32x128xf32> to vector<4x8x128xf32>
    %11 = vector.shape_cast %9 : vector<1x128xf32> to vector<1x1x128xf32>
    %12 = vector.broadcast %11 : vector<1x1x128xf32> to vector<4x8x128xf32>
    %13 = arith.mulf %10, %12 : vector<4x8x128xf32>
    %cst_9 = arith.constant dense<0.000000e+00> : vector<4x8xf32>
    %14 = vector.multi_reduction <add>, %13, %cst_9 [2] : vector<4x8x128xf32> to vector<4x8xf32>
    %c0_10 = arith.constant 0 : index
    %c0_11 = arith.constant 0 : index
    %15 = memref.load %arg5[%c0_10, %c0_11] : memref<1x1xf32, #tpu.memory_space<smem>>
    %16 = vector.broadcast %15 : f32 to vector<4x8xf32>
    %17 = arith.addf %14, %16 : vector<4x8xf32>
    %cst_12 = arith.constant dense<0xFF800000> : vector<4xf32>
    %18 = vector.multi_reduction <maximumf>, %17, %cst_12 [1] : vector<4x8xf32> to vector<4xf32>
    %19 = vector.shape_cast %18 : vector<4xf32> to vector<4x1xf32>
    %20 = vector.broadcast %19 : vector<4x1xf32> to vector<4x8xf32>
    %21 = arith.subf %17, %20 : vector<4x8xf32>
    %22 = math.exp %21 : vector<4x8xf32>
    %cst_13 = arith.constant dense<0.000000e+00> : vector<4xf32>
    %23 = vector.multi_reduction <add>, %22, %cst_13 [1] : vector<4x8xf32> to vector<4xf32>
    %24 = vector.shape_cast %23 : vector<4xf32> to vector<4x1xf32>
    %25 = tpu.reciprocal %24 {approx = true} : vector<4x1xf32> -> vector<4x1xf32>
    %26 = vector.broadcast %25 : vector<4x1xf32> to vector<4x8xf32>
    %27 = arith.mulf %22, %26 : vector<4x8xf32>
    %28 = vector.shape_cast %27 : vector<4x8xf32> to vector<4x8x1xf32>
    %29 = vector.broadcast %28 : vector<4x8x1xf32> to vector<4x8x128xf32>
    %30 = arith.mulf %0, %29 : vector<4x8x128xf32>
    %cst_14 = arith.constant dense<0.000000e+00> : vector<4x128xf32>
    %31 = vector.multi_reduction <add>, %30, %cst_14 [1] : vector<4x8x128xf32> to vector<4x128xf32>
    %c0_15 = arith.constant 0 : index
    %c0_16 = arith.constant 0 : index
    %32 = vector.load %arg6[%c0_15, %c0_16] : memref<4x128xf32, #tpu.memory_space<vmem>>, vector<4x128xf32>
    tpu.vector_store %arg6[%c0_15, %c0_16], %31 {strides = array<i32>} : memref<4x128xf32, #tpu.memory_space<vmem>>, vector<4x128xf32>,
    return
  }
  func.func @transform_0(%arg0: i32) -> (i32, i32, i32) {
    %c0_i32 = arith.constant 0 : i32
    %c0_i32_0 = arith.constant 0 : i32
    %c0_i32_1 = arith.constant 0 : i32
    return %arg0, %c0_i32, %c0_i32_0 : i32, i32, i32
  }
  func.func @transform_1(%arg0: i32) -> (i32, i32) {
    %c0_i32 = arith.constant 0 : i32
    %c0_i32_0 = arith.constant 0 : i32
    %c0_i32_1 = arith.constant 0 : i32
    return %c0_i32, %c0_i32_0 : i32, i32
  }
  func.func @transform_2(%arg0: i32) -> (i32, i32) {
    %c0_i32 = arith.constant 0 : i32
    %c0_i32_0 = arith.constant 0 : i32
    %c0_i32_1 = arith.constant 0 : i32
    return %c0_i32, %c0_i32_0 : i32, i32
  }
  func.func @transform_3(%arg0: i32) -> (i32, i32) {
    %c0_i32 = arith.constant 0 : i32
    %c0_i32_0 = arith.constant 0 : i32
    %c0_i32_1 = arith.constant 0 : i32
    return %c0_i32, %c0_i32_0 : i32, i32
  }
  func.func @transform_4(%arg0: i32) -> (i32, i32) {
    %c0_i32 = arith.constant 0 : i32
    %c0_i32_0 = arith.constant 0 : i32
    %c0_i32_1 = arith.constant 0 : i32
    return %c0_i32, %c0_i32_0 : i32, i32
  }
  func.func @transform_5(%arg0: i32) -> (i32, i32) {
    %c0_i32 = arith.constant 0 : i32
    %c0_i32_0 = arith.constant 0 : i32
    return %arg0, %c0_i32 : i32, i32
  }
}

</mosaic_0001>

<bundles_post_ra>
// kernel: tpu_custom_call.1
= control target key start
LH: loop header
LB: loop body
LE: loop exit
PB: predicated region body
PF: predicated region fallthrough
CT: control target
= control target key end

     0   :  { %11 = vsyncpa [#allocation4], 0  ;;  %s718_s0 = inlined_call_operand.hbm [shape: f32[4,8,128], index: 0, kind: input, shape index: {}]   ;;  %s719_s1 = inlined_call_operand.hbm [shape: f32[128,128], index: 1, kind: input, shape index: {}]   ;;  %s720_s2 = inlined_call_operand.vmem [shape: f32[1,128], index: 2, kind: input, shape index: {}]   ;;  %s721_s3 = inlined_call_operand.vmem [shape: f32[1,128], index: 3, kind: input, shape index: {}]   ;;  %s722_s4 = inlined_call_operand.<no memory space> [shape: f32[1,1], index: 4, kind: input, shape index: {}]   ;;  %s723_s5 = inlined_call_operand.hbm [shape: f32[4,128], index: 5, kind: output, shape index: {}]  }
   0x1   :  { %12 = vsyncpa [#allocation7], 0 }
   0x2   :  { %13 = vsyncpa [#allocation5], 0  ;;  %s593_s18 = smov [#allocation3]   ;;  %s521_s22 = scalar_lea.hbm %s718_s0, 512 }
   0x3   :  { %s19_s19 = sshll.u32 %s593_s18, 4  ;;  %p522_p0 = scmp.ne.s32.totalorder %s718_s0, %s521_s22  ;;  %s20_s19 = int_to_ptr.vmem [resolvable:$true] %s19_s19 }
   0x4   :  { %p525_p1 = scmp.lt.u32.totalorder %s521_s22, %s718_s0 }
   0x6   :  { %p527_p2 = pnand %p525_p1, %p522_p0 }
   0x8   :  { %530 = shalt.err (!%p527_p2)
}
   0x9   :  { %s531_s27 = scalar_lea.vmem %s20_s19, 512  ;;  %p536_p4 = scmp.lt.s32.totalorder %s20_s19, %s20_s19 }
   0xa   :  { %p532_p3 = scmp.ne.s32.totalorder %s20_s19, %s531_s27  ;;  %p537_p5 = scmp.lt.s32.totalorder %s531_s27, %s531_s27 }
   0xc   :  { %p538_p6 = por %p537_p5, %p536_p4 }
   0xe   :  { %p539_p7 = pnand %p538_p6, %p532_p3 }
  0x10   :  { %542 = shalt.err (!%p539_p7)
}
  0x11   :  { %s594_s28 = smov 128   ;;  %s595_s29 = smov 8  }
  0x12   :  { %25 = dma.hbm_to_vmem [thread:$0]  %s718_s0, 512, %s20_s19, [#allocation4], %s594_s28, %s594_s28, %s595_s29  }
  0x13   :  { %s596_s7 = smov [#allocation6]   ;;  %s543_s11 = scalar_lea.hbm %s719_s1, 2048 }
  0x14   :  { %s31_s8 = sshll.u32 %s596_s7, 4  ;;  %p544_p8 = scmp.ne.s32.totalorder %s719_s1, %s543_s11  ;;  %s32_s8 = int_to_ptr.vmem [resolvable:$true] %s31_s8 }
  0x15   :  { %p547_p9 = scmp.lt.u32.totalorder %s543_s11, %s719_s1 }
  0x17   :  { %p549_p10 = pnand %p547_p9, %p544_p8 }
  0x19   :  { %552 = shalt.err (!%p549_p10)
}
  0x1a   :  { %s553_s16 = scalar_lea.vmem %s32_s8, 2048  ;;  %p558_p12 = scmp.lt.s32.totalorder %s32_s8, %s32_s8 }
  0x1b   :  { %p554_p11 = scmp.ne.s32.totalorder %s32_s8, %s553_s16  ;;  %p559_p13 = scmp.lt.s32.totalorder %s553_s16, %s553_s16 }
  0x1d   :  { %p560_p0 = por %p559_p13, %p558_p12 }
  0x1f   :  { %p561_p1 = pnand %p560_p0, %p554_p11 }
  0x21   :  { %564 = shalt.err (!%p561_p1)
}
  0x22   :  { %37 = dma.hbm_to_vmem [thread:$0]  %s719_s1, 2048, %s32_s8, [#allocation7], %s594_s28, %s594_s28, %s595_s29  }
  0x23   :  { %587 = dma.done.wait [#allocation4], 512  }
  0x24   :  { %588 = vsyncadd [#allocation4], 4294966784 }
  0x25   :  { %589 = dma.done.wait [#allocation7], 2048  }
  0x26   :  { %590 = vsyncadd [#allocation7], 4294965248  ;;  %v54_v0 = vld [vmem:[#allocation6] sm:$0xff]  ;;  %v55_v1 = vld [vmem:[#allocation6 + $0x8] sm:$0xff]  ;;  %v195_v46 = vlaneseq  ;;  %v186_v49 = vstv %s722_s4  ;;  %vm213_vm0 = vcmask 1041409   ;;  %vm215_vm1 = vcmask 1042434  }
  0x27   :  { %v56_v2 = vld [vmem:[#allocation6 + $0x10] sm:$0xff]  ;;  %v455_v3 = vpack.c.bf16 %v55_v1, %v54_v0  ;;  %v57_v4 = vld [vmem:[#allocation6 + $0x18] sm:$0xff]  ;;  %v58_v6 = vld [vmem:[#allocation6 + $0x20] sm:$0xff]  ;;  %vm217_vm2 = vcmask 1043459   ;;  %vm220_vm3 = vcmask 60416  }
  0x28   :  { %v459_v5 = vpack.c.bf16 %v57_v4, %v56_v2  ;;  %v59_v7 = vld [vmem:[#allocation6 + $0x28] sm:$0xff]  ;;  %v653_v9 = vld [vmem:[#allocation3] sm:$0xff]  ;;  %v655_v10 = vld [vmem:[#allocation3 + $0x10] sm:$0xff]  ;;  %v196_v47 = vand.u32 127, %v195_v46  ;;  %v671_v48 = vshrl.u32 %v195_v46, 7 }
  0x29   :  { %456 = vmatprep.subr.bf16.mxu0 %v455_v3  ;;  %487 = vmatprep.subr.bf16.mxu1 %v455_v3  ;;  %v463_v8 = vpack.c.bf16 %v59_v7, %v58_v6  ;;  %v60_v11 = vld [vmem:[#allocation6 + $0x30] sm:$0xff]  ;;  %v61_v12 = vld [vmem:[#allocation6 + $0x38] sm:$0xff]  ;;  %v62_v14 = vld [vmem:[#allocation6 + $0x40] sm:$0xff] }
  0x2a   :  { %458 = vmatpush3.bf16.msra.mxu0 %v455_v3  ;;  %495 = vmatpush3.bf16.msra.mxu1 %v455_v3  ;;  %v467_v13 = vpack.c.bf16 %v61_v12, %v60_v11  ;;  %v63_v15 = vld [vmem:[#allocation6 + $0x48] sm:$0xff]  ;;  %v64_v17 = vld [vmem:[#allocation6 + $0x50] sm:$0xff]  ;;  %v65_v18 = vld [vmem:[#allocation6 + $0x58] sm:$0xff]  ;;  %v677_v52 = vsub.s32 %v196_v47, %v671_v48  ;;  %v597_v3 = vmov 0   ;;  %v227_v4 = vsub.s32 0, %v671_v48 }
  0x2b   :  { %460 = vmatprep.subr.bf16.mxu0 %v459_v5  ;;  %488 = vmatprep.subr.bf16.mxu1 %v459_v5  ;;  %v471_v16 = vpack.c.bf16 %v63_v15, %v62_v14  ;;  %v475_v19 = vpack.c.bf16 %v65_v18, %v64_v17  ;;  %v66_v20 = vld [vmem:[#allocation6 + $0x60] sm:$0xff]  ;;  %v67_v21 = vld [vmem:[#allocation6 + $0x68] sm:$0xff]  ;;  %v68_v23 = vld [vmem:[#allocation6 + $0x70] sm:$0xff]  ;;  %v235_v6 = vsub.s32 2, %v671_v48  ;;  %v239_v7 = vsub.s32 3, %v671_v48 }
  0x2c   :  { %449 = vmatprep.mubr.f32.mxu0 %v653_v9  ;;  %452 = vmatprep.mubr.f32.mxu1 %v655_v10  ;;  %v479_v22 = vpack.c.bf16 %v67_v21, %v66_v20  ;;  %v69_v24 = vld [vmem:[#allocation6 + $0x78] sm:$0xff]  ;;  %v659_v26 = vld [vmem:[#allocation3 + $0x8] sm:$0xff]  ;;  %v395_v28 = vld [vmem:[%s720_s2] ss:$0 sm:$0xff] }
  0x2d   :  { %v483_v25 = vpack.c.bf16 %v69_v24, %v68_v23  ;;  %v661_v27 = vld [vmem:[#allocation3 + $0x18] sm:$0xff]  ;;  %v396_v37 = vld [vmem:[%s721_s3] ss:$0 sm:$0xff]  ;;  %510 = vset.pattern.permute.xlu0 %v597_v3  ;;  %509 = vset.pattern.permute.xlu1 %v597_v3  ;;  %s598_s3 = smov [#allocation8]  }
  0x2e   :  { %462 = vmatpush3.bf16.msra.mxu0 %v459_v5  ;;  %496 = vmatpush3.bf16.msra.mxu1 %v459_v5  ;;  %v231_v5 = vsub.s32 1, %v671_v48  ;;  %s385_s4 = sshll.u32 %s598_s3, 4  ;;  %s386_s4 = int_to_ptr.vmem [resolvable:$true] %s385_s4 }
  0x2f   :  { %464 = vmatprep.subr.bf16.mxu0 %v463_v8  ;;  %489 = vmatprep.subr.bf16.mxu1 %v463_v8  ;;  %s565_s22 = scalar_lea.vmem %s386_s4, 64  ;;  %p570_p3 = scmp.lt.s32.totalorder %s386_s4, %s386_s4 }
  0x30   :  { %p566_p2 = scmp.ne.s32.totalorder %s386_s4, %s565_s22  ;;  %p571_p4 = scmp.lt.s32.totalorder %s565_s22, %s565_s22 }
  0x32   :  { %466 = vmatpush3.bf16.msra.mxu0 %v463_v8  ;;  %497 = vmatpush3.bf16.msra.mxu1 %v463_v8  ;;  %p572_p5 = por %p571_p4, %p570_p3 }
  0x33   :  { %468 = vmatprep.subr.bf16.mxu0 %v467_v13  ;;  %490 = vmatprep.subr.bf16.mxu1 %v467_v13 }
  0x34   :  { %p573_p6 = pnand %p572_p5, %p566_p2 }
  0x36   :  { %470 = vmatpush3.bf16.msra.mxu0 %v467_v13  ;;  %498 = vmatpush3.bf16.msra.mxu1 %v467_v13 }
  0x37   :  { %472 = vmatprep.subr.bf16.mxu0 %v471_v16  ;;  %491 = vmatprep.subr.bf16.mxu1 %v471_v16 }
  0x3a   :  { %474 = vmatpush3.bf16.msra.mxu0 %v471_v16  ;;  %499 = vmatpush3.bf16.msra.mxu1 %v471_v16 }
  0x3b   :  { %476 = vmatprep.subr.bf16.mxu0 %v475_v19  ;;  %492 = vmatprep.subr.bf16.mxu1 %v475_v19 }
  0x3e   :  { %478 = vmatpush3.bf16.msra.mxu0 %v475_v19  ;;  %500 = vmatpush3.bf16.msra.mxu1 %v475_v19 }
  0x3f   :  { %480 = vmatprep.subr.bf16.mxu0 %v479_v22  ;;  %493 = vmatprep.subr.bf16.mxu1 %v479_v22 }
  0x42   :  { %482 = vmatpush3.bf16.msra.mxu0 %v479_v22  ;;  %501 = vmatpush3.bf16.msra.mxu1 %v479_v22 }
  0x43   :  { %484 = vmatprep.subr.bf16.mxu0 %v483_v25  ;;  %494 = vmatprep.subr.bf16.mxu1 %v483_v25 }
  0x46   :  { %486 = vmatpush3.bf16.msra.mxu0 %v483_v25  ;;  %502 = vmatpush3.bf16.msra.mxu1 %v483_v25 }
  0x49   :  { %450 = vmatmul.mubr.f32.vlgmr.msra.gmra.mrb[0].mxu0 %v659_v26  ;;  %453 = vmatmul.mubr.f32.vlgmr.msra.gmra.mrb[0].mxu1 %v661_v27 }
 0x11c   :  { %v451_v29 = vpop.f32.mrb[0].mxu0  ;;  %v454_v30 = vpop.f32.mrb[0].mxu1 }
 0x11d   :  { %v143_v31 = vpop.f32.mrb[1].mxu0  ;;  %v153_v32 = vpop.f32.mrb[1].mxu1  ;;  %v149_v33 = vadd.f32 %v451_v29, %v395_v28  ;;  %v159_v34 = vadd.f32 %v454_v30, %v395_v28 }
 0x11e   :  { %v144_v35 = vadd.f32 %v395_v28, %v143_v31  ;;  %v154_v36 = vadd.f32 %v395_v28, %v153_v32 }
 0x11f   :  { %v163_v40 = vmax.f32 %v149_v33, 0.0  ;;  %v165_v41 = vmax.f32 %v159_v34, 0.0 }
 0x120   :  { %v162_v38 = vmax.f32 %v144_v35, 0.0  ;;  %v164_v39 = vmax.f32 %v154_v36, 0.0 }
 0x121   :  { %v176_v44 = vmul.f32 %v396_v37, %v165_v41  ;;  %v174_v45 = vmul.f32 %v396_v37, %v163_v40 }
 0x122   :  { %v175_v42 = vmul.f32 %v396_v37, %v164_v39  ;;  %v173_v43 = vmul.f32 %v396_v37, %v162_v38 }
 0x124   :  { %181 = vadd.xlane.f32.xlu1 %v175_v42  ;;  %177 = vadd.xlane.f32.xlu0 %v173_v43 }
 0x128   :  { %183 = vadd.xlane.f32.xlu1 %v176_v44  ;;  %179 = vadd.xlane.f32.xlu0 %v174_v45 }
 0x1b1   :  { %v182_v50 = vpop.xlane.xlu1 %181  ;;  %v178_v51 = vpop.xlane.xlu0 %177 }
 0x1b2   :  { %v187_v53 = vadd.f32 %v186_v49, %v178_v51  ;;  %v189_v54 = vadd.f32 %v186_v49, %v182_v50 }
 0x1b4   :  { %v200_v59 = vrot.slane %v187_v53, %v677_v52  ;;  %v208_v61 = vrot.slane %v189_v54, %v677_v52 }
 0x1b5   :  { %v184_v55 = vpop.xlane.xlu1 %183  ;;  %v180_v56 = vpop.xlane.xlu0 %179 }
 0x1b6   :  { %v190_v57 = vadd.f32 %v186_v49, %v184_v55  ;;  %v188_v58 = vadd.f32 %v186_v49, %v180_v56 }
 0x1b8   :  { %v204_v60 = vrot.slane %v188_v58, %v677_v52  ;;  %v212_v62 = vrot.slane %v190_v57, %v677_v52 }
 0x1ba   :  { %v214_v63 = vsel %vm213_vm0, %v204_v60, %v200_v59 }
 0x1bb   :  { %v216_v0 = vsel %vm215_vm1, %v208_v61, %v214_v63 }
 0x1bc   :  { %v218_v1 = vsel %vm217_vm2, %v212_v62, %v216_v0 }
 0x1bd   :  { %v221_v2 = vsel %vm220_vm3, %v218_v1, -inf }
 0x1be   :  { %222 = vmax.xlane.f32.xlu0 %v221_v2 }
 0x24b   :  { %v223_v8 = vpop.xlane.xlu0 %222 }
 0x24c   :  { %v228_v11 = vrot.slane %v223_v8, %v227_v4  ;;  %v232_v12 = vrot.slane %v223_v8, %v231_v5  ;;  %v236_v13 = vrot.slane %v223_v8, %v235_v6  ;;  %v240_v14 = vrot.slane %v223_v8, %v239_v7 }
 0x24e   :  { %v245_v15 = vsub.f32 %v187_v53, %v228_v11  ;;  %v246_v16 = vsub.f32 %v188_v58, %v232_v12  ;;  %v247_v17 = vsub.f32 %v189_v54, %v236_v13  ;;  %v248_v20 = vsub.f32 %v190_v57, %v240_v14 }
 0x250   :  { %v249_v18 = vmul.f32 1.442695, %v245_v15  ;;  %v251_v19 = vmul.f32 1.442695, %v246_v16  ;;  %v253_v21 = vmul.f32 1.442695, %v247_v17 }
 0x251   :  { %v255_v22 = vmul.f32 1.442695, %v248_v20 }
 0x252   :  { %511 = vpow2.f32 %v249_v18 }
 0x253   :  { %513 = vpow2.f32 %v251_v19 }
 0x254   :  { %515 = vpow2.f32 %v253_v21 }
 0x255   :  { %517 = vpow2.f32 %v255_v22 }
 0x25c   :  { %v512_v23 = vpop.eup %511 }
 0x25d   :  { %v514_v24 = vpop.eup %513  ;;  %262 = vperm.xlu1 %509, %v512_v23  }
 0x25e   :  { %265 = vperm.xlu0 %510, %v514_v24   ;;  %v516_v25 = vpop.eup %515 }
 0x25f   :  { %v518_v28 = vpop.eup %517 }
 0x261   :  { %268 = vperm.xlu1 %509, %v516_v25  }
 0x265   :  { %271 = vperm.xlu1 %509, %v518_v28  }
 0x2dc   :  { %v263_v29 = vpop.permute.xlu1 %262 }
 0x2dd   :  { %v266_v30 = vpop.permute.xlu0 %265  ;;  %v276_v33 = vrot.slane %v263_v29, %v677_v52 }
 0x2de   :  { %v280_v32 = vrot.slane %v266_v30, %v677_v52 }
 0x2e0   :  { %v269_v31 = vpop.permute.xlu1 %268  ;;  %v289_v36 = vsel %vm213_vm0, %v280_v32, %v276_v33 }
 0x2e1   :  { %v284_v34 = vrot.slane %v269_v31, %v677_v52 }
 0x2e3   :  { %v290_v38 = vsel %vm215_vm1, %v284_v34, %v289_v36 }
 0x2e4   :  { %v272_v35 = vpop.permute.xlu1 %271 }
 0x2e5   :  { %v288_v37 = vrot.slane %v272_v35, %v677_v52 }
 0x2e7   :  { %v291_v39 = vsel %vm217_vm2, %v288_v37, %v290_v38 }
 0x2e8   :  { %v293_v40 = vsel %vm220_vm3, %v291_v39, 0.0 }
 0x2e9   :  { %294 = vadd.xlane.f32.xlu1 %v293_v40 }
 0x376   :  { %v295_v41 = vpop.xlane.xlu1 %294 }
 0x377   :  { %519 = vrcp.f32 %v295_v41 }
 0x381   :  { %v520_v42 = vpop.eup %519 }
 0x382   :  { %v301_v43 = vrot.slane %v520_v42, %v227_v4  ;;  %v305_v45 = vrot.slane %v520_v42, %v231_v5  ;;  %v309_v47 = vrot.slane %v520_v42, %v235_v6  ;;  %v313_v49 = vrot.slane %v520_v42, %v239_v7 }
 0x384   :  { %v318_v44 = vmul.f32 %v512_v23, %v301_v43  ;;  %v319_v46 = vmul.f32 %v514_v24, %v305_v45  ;;  %v320_v48 = vmul.f32 %v516_v25, %v309_v47  ;;  %v321_v50 = vmul.f32 %v518_v28, %v313_v49 }
 0x386   :  { %324 = vperm.xlu0 %510, %v318_v44  }
 0x38a   :  { %329 = vperm.xlu0 %510, %v319_v46  }
 0x38e   :  { %334 = vperm.xlu0 %510, %v320_v48  }
 0x392   :  { %339 = vperm.xlu0 %510, %v321_v50  }
 0x405   :  { %v325_v51 = vpop.permute.xlu0 %324 }
 0x406   :  { %v342_v52 = vmul.f32 %v325_v51, %v653_v9 }
 0x408   :  { %v346_v53 = vrot.slane %v342_v52, 4 }
 0x409   :  { %v330_v54 = vpop.permute.xlu0 %329 }
 0x40a   :  { %v343_v55 = vmul.f32 %v330_v54, %v659_v26  ;;  %v347_v56 = vadd.f32 %v346_v53, %v342_v52 }
 0x40c   :  { %v352_v57 = vrot.slane %v343_v55, 4  ;;  %v348_v61 = vrot.slane %v347_v56, 2 }
 0x40d   :  { %v335_v58 = vpop.permute.xlu0 %334 }
 0x40e   :  { %v353_v59 = vadd.f32 %v352_v57, %v343_v55  ;;  %v344_v60 = vmul.f32 %v335_v58, %v655_v10  ;;  %v349_v4 = vadd.f32 %v348_v61, %v347_v56 }
 0x410   :  { %v354_v62 = vrot.slane %v353_v59, 2  ;;  %v358_v63 = vrot.slane %v344_v60, 4  ;;  %v350_v8 = vrot.slane %v349_v4, 1 }
 0x411   :  { %v340_v0 = vpop.permute.xlu0 %339 }
 0x412   :  { %v355_v1 = vadd.f32 %v354_v62, %v353_v59  ;;  %v359_v2 = vadd.f32 %v358_v63, %v344_v60  ;;  %v345_v3 = vmul.f32 %v340_v0, %v661_v27  ;;  %v351_v15 = vadd.f32 %v350_v8, %v349_v4 }
 0x414   :  { %v360_v9 = vrot.slane %v359_v2, 2  ;;  %v364_v5 = vrot.slane %v345_v3, 4  ;;  %v356_v6 = vrot.slane %v355_v1, 1 }
 0x416   :  { %v361_v7 = vadd.f32 %v360_v9, %v359_v2  ;;  %v365_v26 = vadd.f32 %v364_v5, %v345_v3  ;;  %v357_v13 = vadd.f32 %v356_v6, %v355_v1 }
 0x418   :  { %v362_v11 = vrot.slane %v361_v7, 1  ;;  %v366_v12 = vrot.slane %v365_v26, 2  ;;  %v374_v18 = vsel %vm213_vm0, %v357_v13, %v351_v15 }
 0x41a   :  { %v367_v14 = vadd.f32 %v366_v12, %v365_v26  ;;  %v363_v10 = vadd.f32 %v362_v11, %v361_v7 }
 0x41c   :  { %v368_v16 = vrot.slane %v367_v14, 1  ;;  %v375_v27 = vsel %vm215_vm1, %v363_v10, %v374_v18 }
 0x41e   :  { %v369_v17 = vadd.f32 %v368_v16, %v367_v14 }
 0x420   :  { %v376_v19 = vsel %vm217_vm2, %v369_v17, %v375_v27 }
 0x421   :  { %378 = vst [vmem:[#allocation8] sm:$0xf] %v376_v19 }
 0x422   :  { %576 = shalt.err (!%p573_p6)
}
 0x423   :  { %s577_s25 = scalar_lea.hbm %s723_s5, 64 }
 0x424   :  { %p578_p7 = scmp.ne.s32.totalorder %s723_s5, %s577_s25  ;;  %p581_p8 = scmp.lt.u32.totalorder %s577_s25, %s723_s5 }
 0x426   :  { %p583_p9 = pnand %p581_p8, %p578_p7 }
 0x428   :  { %586 = shalt.err (!%p583_p9)
}
 0x429   :  { %388 = dma.vmem_to_hbm [thread:$0]  %s386_s4, 64, %s723_s5, [#allocation5]  }
 0x42a   :  { %591 = dma.done.wait [#allocation5], 64  }
 0x42b   :  { %592 = vsyncadd [#allocation5], 4294967232 }
 0x42c   :  { %392 = vsyncpa [#allocation4], 1 }
 0x42d   :  { %393 = vsyncpa [#allocation7], 1 }
 0x42e   :  { %394 = vsyncpa [#allocation5], 1 }

</bundles_post_ra>
